<compile_context>
chip_gen: v6e
topology: v6e:2x2x1
jax: 0.10.0
libtpu: 0.0.40
codegen_flags: <defaults>
</compile_context>

<pallas_src>
import functools

import jax
import jax.numpy as jnp
from jax.experimental import pallas as pl
from jax.experimental.pallas import tpu as pltpu


def _conv1x1_bn_act_kernel(apply_act, x_ref, w_ref, bias_ref, o_ref):
    """x: (bn, C1, TM), w: (C2, C1) with BN scale folded in, bias: (C2, 1)."""
    w = w_ref[...]
    bias = bias_ref[...]                      # f32 (C2, 1)
    bn_blk = x_ref.shape[0]
    for b in range(bn_blk):                   # small, static unroll
        # (C2, C1) @ (C1, TM) -> (C2, TM), f32 accumulation on the MXU.
        y = jnp.dot(w, x_ref[b], preferred_element_type=jnp.float32)
        y = y + bias                          # folded BatchNorm bias (f32)
        if apply_act:
            # SiLU in f32 (exact sigmoid; exp(-y)->inf gives 1/inf=0 limit).
            y = y * (1.0 / (1.0 + jnp.exp(-y)))
        o_ref[b] = y.astype(o_ref.dtype)


def _tpu_generation():
    try:
        kind = jax.devices()[0].device_kind.lower()
    except Exception:
        return 0
    for g in (7, 6, 5):
        if f"v{g}" in kind:
            return g
    return 0


def _pick_tiles(N, HW, c1, c2, x_bytes, o_bytes, w_bytes, min_steps, budget):
    """Pick (bn, tm): batch block and lane-dense pixel tile along H*W."""
    # Fixed VMEM cost: weights + bias (double-buffered by the pipeline).
    fixed = 2 * c1 * c2 * w_bytes + 2 * c2 * 4
    avail = max(budget - fixed, 256 * 1024)
    col_cost = 2 * (c1 * x_bytes + c2 * o_bytes)   # per lane column, dbl-buffered
    max_cols = max(avail // col_cost, 128)

    # Lane tile along H*W: whole extent when it fits (always a legal block),
    # otherwise the largest multiple of 128 within budget (ragged edge is OK).
    if HW <= max_cols:
        tm = HW
    else:
        tm = max(128, (max_cols // 128) * 128)

    # Pack batch items per step while in budget to keep each step large.
    bn = 1
    if tm == HW:
        while bn < N and (bn + 1) * tm <= max_cols and bn * tm < 2048:
            bn += 1

    # On v7x target >=4 grid steps (>=2 per TensorCore) when tiles stay big.
    def steps(b, t):
        return pl.cdiv(N, b) * pl.cdiv(HW, t)

    while steps(bn, tm) < min_steps:
        if bn > 1:
            bn = max(1, bn // 2)
        elif tm >= 1024 and tm % 256 == 0:
            tm //= 2
        elif tm == HW and HW >= 1024:
            tm = max(512, (HW // 2 // 128) * 128)
        else:
            break                               # keep lane tiles dense instead
    return bn, tm


def conv8_forward(x, weight, gamma, beta, running_mean, running_var,
                  eps=1e-5, act=True):
    """Forward of Conv8 (1x1 conv, no bias) + eval-mode BN + SiLU, NCHW in/out."""
    N, C1, H, W = x.shape
    C2 = weight.shape[0]
    # TODO(synk): only the module's default config (k=1, s=1, p=0, g=1, d=1,
    # eval-mode BN) is implemented; general k/stride/groups/dilation would need
    # an im2col front-end, and training-mode BN stat updates are out of scope.
    assert weight.shape == (C2, C1, 1, 1), "only k=1, groups=1 supported"

    f32 = jnp.float32
    inv_std = 1.0 / jnp.sqrt(running_var.astype(f32) + eps)
    scale = gamma.astype(f32) * inv_std                               # (C2,)
    bias = (beta.astype(f32) - running_mean.astype(f32) * scale).reshape(C2, 1)
    # Fold BN scale into the tiny weight matrix; keep matmul operands in the
    # activation dtype so bf16 models stream bf16 through HBM/VMEM.
    w2d = (weight.reshape(C2, C1).astype(f32) * scale[:, None]).astype(x.dtype)

    HW = H * W
    x3 = x.reshape(N, C1, HW)                 # free view of NCHW

    gen = _tpu_generation()
    min_steps = 4 if gen == 7 else 1
    budget, vmem_limit = {
        5: (14 * 2**20, 32 * 2**20),
        6: (48 * 2**20, 64 * 2**20),
        7: (32 * 2**20, 48 * 2**20),
    }.get(gen, (16 * 2**20, 32 * 2**20))

    x_bytes = jnp.dtype(x.dtype).itemsize
    w_bytes = jnp.dtype(w2d.dtype).itemsize
    bn_blk, tm = _pick_tiles(N, HW, C1, C2, x_bytes, x_bytes, w_bytes,
                             min_steps, budget)
    grid = (pl.cdiv(N, bn_blk), pl.cdiv(HW, tm))

    cost = pl.CostEstimate(
        flops=2 * C2 * C1 * N * HW,
        transcendentals=(C2 * N * HW if act else 0),
        bytes_accessed=(x_bytes * C1 * N * HW      # activations in
                        + x_bytes * C2 * N * HW    # activations out
                        + w_bytes * C2 * C1        # folded weights
                        + 4 * C2),                 # folded bias (f32)
    )

    out3 = pl.pallas_call(
        functools.partial(_conv1x1_bn_act_kernel, bool(act)),
        out_shape=jax.ShapeDtypeStruct((N, C2, HW), x.dtype),
        grid_spec=pltpu.PrefetchScalarGridSpec(
            num_scalar_prefetch=0,
            grid=grid,
            in_specs=[
                pl.BlockSpec((bn_blk, C1, tm), lambda n, j: (n, 0, j)),  # x tile
                pl.BlockSpec((C2, C1), lambda n, j: (0, 0)),             # weights
                pl.BlockSpec((C2, 1), lambda n, j: (0, 0)),              # BN bias
            ],
            out_specs=pl.BlockSpec((bn_blk, C2, tm), lambda n, j: (n, 0, j)),
        ),
        compiler_params=pltpu.CompilerParams(
            dimension_semantics=("parallel", "parallel"),
            vmem_limit_bytes=vmem_limit,
        ),
        cost_estimate=cost,
    )(x3, w2d, bias)

    return out3.reshape(N, C2, H, W)          # free view back to NCHW


if __name__ == "__main__":
    key = jax.random.PRNGKey(0)
    kx, kw, kg, kb, km, kv = jax.random.split(key, 6)

    # Small shapes consistent with Conv8 defaults: NCHW, 1x1 conv, c1=4 -> c2=8.
    N, C1, C2, H, W = 2, 4, 8, 16, 16
    eps = 1e-5

    x = jax.random.normal(kx, (N, C1, H, W), dtype=jnp.float32)
    weight = jax.random.normal(kw, (C2, C1, 1, 1), dtype=jnp.float32) * 0.5
    gamma = 1.0 + 0.1 * jax.random.normal(kg, (C2,), dtype=jnp.float32)
    beta = 0.1 * jax.random.normal(kb, (C2,), dtype=jnp.float32)
    running_mean = 0.1 * jax.random.normal(km, (C2,), dtype=jnp.float32)
    running_var = jax.random.uniform(kv, (C2,), dtype=jnp.float32,
                                     minval=0.5, maxval=1.5)

    out = conv8_forward(x, weight, gamma, beta, running_mean, running_var, eps=eps)
    out = jax.block_until_ready(out)

    # Pure-JAX reference: conv(1x1) -> BN(eval) -> SiLU.
    w2d_ref = weight.reshape(C2, C1)
    conv_ref = jnp.einsum("oc,nchw->nohw", w2d_ref, x,
                          precision=jax.lax.Precision.HIGHEST)
    inv_std = 1.0 / jnp.sqrt(running_var + eps)
    y_ref = (conv_ref * (gamma * inv_std)[None, :, None, None]
             + (beta - running_mean * gamma * inv_std)[None, :, None, None])
    ref = y_ref * jax.nn.sigmoid(y_ref)

    assert out.shape == (N, C2, H, W)
    assert jnp.allclose(out, ref, rtol=2e-2, atol=2e-2), (
        float(jnp.max(jnp.abs(out - ref))))

    print("KERNEL_OK")
</pallas_src>

<mosaic_0001>
module attributes {stable_mosaic.version = 11 : i64} {
  func.func @_conv1x1_bn_act_kernel(%arg0: i32, %arg1: i32, %arg2: memref<2x4x256xf32, #tpu.memory_space<vmem>>, %arg3: memref<8x4xf32, #tpu.memory_space<vmem>>, %arg4: memref<8x1xf32, #tpu.memory_space<vmem>>, %arg5: memref<2x8x256xf32, #tpu.memory_space<vmem>>) attributes {dimension_semantics = [#tpu.dimension_semantics<parallel>, #tpu.dimension_semantics<parallel>], iteration_bounds = array<i64: 1, 1>, scalar_prefetch = 0 : i64, scratch_operands = 0 : i64, tpu.core_type = #tpu.core_type<tc>, window_params = [{transform_indices = @transform_0, window_bounds = array<i64: 2, 4, 256>}, {pipeline_mode = #tpu.pipeline_mode<synchronous>, transform_indices = @transform_1, window_bounds = array<i64: 8, 4>}, {pipeline_mode = #tpu.pipeline_mode<synchronous>, transform_indices = @transform_2, window_bounds = array<i64: 8, 1>}, {transform_indices = @transform_3, window_bounds = array<i64: 2, 8, 256>}]} {
    %c0 = arith.constant 0 : index
    %c0_0 = arith.constant 0 : index
    %0 = vector.load %arg3[%c0, %c0_0] : memref<8x4xf32, #tpu.memory_space<vmem>>, vector<8x4xf32>
    %c0_1 = arith.constant 0 : index
    %c0_2 = arith.constant 0 : index
    %1 = vector.load %arg4[%c0_1, %c0_2] : memref<8x1xf32, #tpu.memory_space<vmem>>, vector<8x1xf32>
    %c0_3 = arith.constant 0 : index
    %c0_4 = arith.constant 0 : index
    %c0_5 = arith.constant 0 : index
    %2 = vector.load %arg2[%c0_3, %c0_4, %c0_5] : memref<2x4x256xf32, #tpu.memory_space<vmem>>, vector<1x4x256xf32>
    %3 = vector.shape_cast %2 : vector<1x4x256xf32> to vector<4x256xf32>
    %cst = arith.constant dense<0.000000e+00> : vector<8x256xf32>
    %4 = tpu.matmul %0, %3, %cst {dimension_numbers = #tpu.dot_dimension_numbers<[1], [0], [0], [1], [0, 0, 1, 1], [], []>} : vector<8x4xf32>, vector<4x256xf32>, vector<8x256xf32> -> vector<8x256xf32>
    %5 = vector.broadcast %1 : vector<8x1xf32> to vector<8x256xf32>
    %6 = arith.addf %4, %5 : vector<8x256xf32>
    %cst_6 = arith.constant 0.000000e+00 : f32
    %7 = vector.broadcast %cst_6 : f32 to vector<8x256xf32>
    %8 = arith.subf %7, %6 : vector<8x256xf32>
    %9 = math.exp %8 : vector<8x256xf32>
    %cst_7 = arith.constant 1.000000e+00 : f32
    %10 = vector.broadcast %cst_7 : f32 to vector<8x256xf32>
    %11 = arith.addf %10, %9 : vector<8x256xf32>
    %cst_8 = arith.constant 1.000000e+00 : f32
    %12 = vector.broadcast %cst_8 : f32 to vector<8x256xf32>
    %13 = arith.divf %12, %11 : vector<8x256xf32>
    %14 = arith.mulf %6, %13 : vector<8x256xf32>
    %c0_9 = arith.constant 0 : index
    %c0_10 = arith.constant 0 : index
    %c0_11 = arith.constant 0 : index
    %15 = vector.load %arg5[%c0_9, %c0_10, %c0_11] : memref<2x8x256xf32, #tpu.memory_space<vmem>>, vector<1x8x256xf32>
    %16 = vector.shape_cast %15 : vector<1x8x256xf32> to vector<8x256xf32>
    %17 = vector.shape_cast %14 : vector<8x256xf32> to vector<1x8x256xf32>
    tpu.vector_store %arg5[%c0_9, %c0_10, %c0_11], %17 {strides = array<i32>} : memref<2x8x256xf32, #tpu.memory_space<vmem>>, vector<1x8x256xf32>,
    %c1 = arith.constant 1 : index
    %c0_12 = arith.constant 0 : index
    %c0_13 = arith.constant 0 : index
    %18 = vector.load %arg2[%c1, %c0_12, %c0_13] : memref<2x4x256xf32, #tpu.memory_space<vmem>>, vector<1x4x256xf32>
    %19 = vector.shape_cast %18 : vector<1x4x256xf32> to vector<4x256xf32>
    %cst_14 = arith.constant dense<0.000000e+00> : vector<8x256xf32>
    %20 = tpu.matmul %0, %19, %cst_14 {dimension_numbers = #tpu.dot_dimension_numbers<[1], [0], [0], [1], [0, 0, 1, 1], [], []>} : vector<8x4xf32>, vector<4x256xf32>, vector<8x256xf32> -> vector<8x256xf32>
    %21 = vector.broadcast %1 : vector<8x1xf32> to vector<8x256xf32>
    %22 = arith.addf %20, %21 : vector<8x256xf32>
    %cst_15 = arith.constant 0.000000e+00 : f32
    %23 = vector.broadcast %cst_15 : f32 to vector<8x256xf32>
    %24 = arith.subf %23, %22 : vector<8x256xf32>
    %25 = math.exp %24 : vector<8x256xf32>
    %cst_16 = arith.constant 1.000000e+00 : f32
    %26 = vector.broadcast %cst_16 : f32 to vector<8x256xf32>
    %27 = arith.addf %26, %25 : vector<8x256xf32>
    %cst_17 = arith.constant 1.000000e+00 : f32
    %28 = vector.broadcast %cst_17 : f32 to vector<8x256xf32>
    %29 = arith.divf %28, %27 : vector<8x256xf32>
    %30 = arith.mulf %22, %29 : vector<8x256xf32>
    %c1_18 = arith.constant 1 : index
    %c0_19 = arith.constant 0 : index
    %c0_20 = arith.constant 0 : index
    %31 = vector.load %arg5[%c1_18, %c0_19, %c0_20] : memref<2x8x256xf32, #tpu.memory_space<vmem>>, vector<1x8x256xf32>
    %32 = vector.shape_cast %31 : vector<1x8x256xf32> to vector<8x256xf32>
    %33 = vector.shape_cast %30 : vector<8x256xf32> to vector<1x8x256xf32>
    tpu.vector_store %arg5[%c1_18, %c0_19, %c0_20], %33 {strides = array<i32>} : memref<2x8x256xf32, #tpu.memory_space<vmem>>, vector<1x8x256xf32>,
    return
  }
  func.func @transform_0(%arg0: i32, %arg1: i32) -> (i32, i32, i32) {
    %c0_i32 = arith.constant 0 : i32
    %c0_i32_0 = arith.constant 0 : i32
    return %arg0, %c0_i32, %arg1 : i32, i32, i32
  }
  func.func @transform_1(%arg0: i32, %arg1: i32) -> (i32, i32) {
    %c0_i32 = arith.constant 0 : i32
    %c0_i32_0 = arith.constant 0 : i32
    %c0_i32_1 = arith.constant 0 : i32
    return %c0_i32, %c0_i32_0 : i32, i32
  }
  func.func @transform_2(%arg0: i32, %arg1: i32) -> (i32, i32) {
    %c0_i32 = arith.constant 0 : i32
    %c0_i32_0 = arith.constant 0 : i32
    %c0_i32_1 = arith.constant 0 : i32
    return %c0_i32, %c0_i32_0 : i32, i32
  }
  func.func @transform_3(%arg0: i32, %arg1: i32) -> (i32, i32, i32) {
    %c0_i32 = arith.constant 0 : i32
    %c0_i32_0 = arith.constant 0 : i32
    return %arg0, %c0_i32, %arg1 : i32, i32, i32
  }
}

</mosaic_0001>

<bundles_post_ra>
// kernel: tpu_custom_call.1
= control target key start
LH: loop header
LB: loop body
LE: loop exit
PB: predicated region body
PF: predicated region fallthrough
CT: control target
= control target key end

     0   :  { %vm29_vm0 = vcmask 1043456   ;;  %v286_v4 = vmov 0.0   ;;  %s330_s0 = inlined_call_operand.vmem [shape: f32[2,4,256], index: 0, kind: input, shape index: {}]   ;;  %s331_s1 = inlined_call_operand.vmem [shape: f32[8,4], index: 1, kind: input, shape index: {}]   ;;  %s332_s2 = inlined_call_operand.vmem [shape: f32[8,1], index: 2, kind: input, shape index: {}]   ;;  %s333_s3 = inlined_call_operand.hbm [shape: f32[2,8,256], index: 3, kind: output, shape index: {}]  }
   0x1   :  { %v17_v0 = vld [vmem:[%s330_s0] sm:$0xff]  ;;  %v236_v1 = vld [vmem:[%s330_s0 + $0x8] sm:$0xff]  ;;  %98 = vmatprep.mubr.f32.mxu0 %v286_v4  ;;  %193 = vmatprep.mubr.f32.mxu1 %v286_v4 }
   0x2   :  { %v24_v2 = vcombine.high %v17_v0, %v17_v0  ;;  %v124_v3 = vcombine.high %v236_v1, %v236_v1 }
   0x3   :  { %8 = vsyncpa [#allocation3], 0  ;;  %v15_v5 = vld [vmem:[%s331_s1] sm:$0xff]  ;;  %vm25_vm1 = vcmask 31744   ;;  %v287_v6 = vmov 0   ;;  %s288_s0 = smov [#allocation2]  }
   0x4   :  { %245 = vset.pattern.permute.xlu0 %v287_v6  ;;  %233 = vmatprep.subr.msk.mxu0 %vm29_vm0, %v24_v2  ;;  %v16_v7 = vld [vmem:[%s332_s2] sm:$0xff]  ;;  %s222_s1 = sshll.u32 %s288_s0, 4  ;;  %s223_s1 = int_to_ptr.vmem [resolvable:$true] %s222_s1 }
   0x5   :  { %237 = vmatprep.subr.msk.mxu1 %vm29_vm0, %v124_v3  ;;  %234 = vmatpush1.msk.msra.mxu0 %vm29_vm0, %v17_v0  ;;  %s264_s2 = scalar_lea.vmem %s223_s1, 512  ;;  %p269_p1 = scmp.lt.s32.totalorder %s223_s1, %s223_s1 }
   0x6   :  { %238 = vmatpush1.msk.msra.mxu1 %vm29_vm0, %v236_v1  ;;  %235 = vmatmul.mubr.msk.f32.vlgmr.msra.gmra.mxu0 %vm25_vm1, %v15_v5  ;;  %p265_p0 = scmp.ne.s32.totalorder %s223_s1, %s264_s2  ;;  %p270_p2 = scmp.lt.s32.totalorder %s264_s2, %s264_s2 }
   0x7   :  { %239 = vmatmul.mubr.msk.f32.vlgmr.msra.gmra.mxu1 %vm25_vm1, %v15_v5  ;;  %20 = vperm.xlu0 %245, %v16_v7  }
   0x8   :  { %p271_p3 = por %p270_p2, %p269_p1 }
   0xa   :  { %p272_p4 = pnand %p271_p3, %p265_p0 }
  0x82   :  { %v21_v8 = vpop.permute.xlu0 %20 }
  0xc6   :  { %v100_v9 = vpop.f32.mrf.mxu0 }
  0xc7   :  { %v195_v10 = vpop.f32.mrf.mxu1  ;;  %v101_v11 = vadd.f32 %v100_v9, %v21_v8 }
  0xc8   :  { %v196_v12 = vadd.f32 %v195_v10, %v21_v8  ;;  %v102_v13 = vpop.f32.mrf.mxu0 }
  0xc9   :  { %v197_v14 = vpop.f32.mrf.mxu1  ;;  %v105_v15 = vsub.f32 0.0, %v101_v11  ;;  %v103_v17 = vadd.f32 %v102_v13, %v21_v8 }
  0xca   :  { %v200_v16 = vsub.f32 0.0, %v196_v12  ;;  %v198_v18 = vadd.f32 %v197_v14, %v21_v8 }
  0xcb   :  { %v107_v19 = vmul.f32 1.442695, %v105_v15  ;;  %v106_v21 = vsub.f32 0.0, %v103_v17 }
  0xcc   :  { %v202_v20 = vmul.f32 1.442695, %v200_v16  ;;  %v201_v22 = vsub.f32 0.0, %v198_v18 }
  0xcd   :  { %248 = vpow2.f32 %v107_v19  ;;  %v109_v23 = vmul.f32 1.442695, %v106_v21 }
  0xce   :  { %v204_v24 = vmul.f32 1.442695, %v201_v22  ;;  %250 = vpow2.f32 %v202_v20 }
  0xcf   :  { %252 = vpow2.f32 %v109_v23 }
  0xd0   :  { %254 = vpow2.f32 %v204_v24 }
  0xda   :  { %v249_v25 = vpop.eup %248 }
  0xdb   :  { %v251_v26 = vpop.eup %250  ;;  %v111_v27 = vadd.f32 1.0, %v249_v25 }
  0xdc   :  { %v253_v28 = vpop.eup %252  ;;  %v206_v29 = vadd.f32 1.0, %v251_v26 }
  0xdd   :  { %v255_v30 = vpop.eup %254  ;;  %256 = vrcp.f32 %v111_v27  ;;  %v112_v31 = vadd.f32 1.0, %v253_v28 }
  0xde   :  { %258 = vrcp.f32 %v206_v29  ;;  %v207_v32 = vadd.f32 1.0, %v255_v30 }
  0xdf   :  { %260 = vrcp.f32 %v112_v31 }
  0xe0   :  { %262 = vrcp.f32 %v207_v32 }
  0xea   :  { %v257_v33 = vpop.eup %256 }
  0xeb   :  { %v259_v34 = vpop.eup %258  ;;  %v117_v35 = vmul.f32 %v257_v33, %v101_v11 }
  0xec   :  { %v261_v36 = vpop.eup %260  ;;  %v212_v37 = vmul.f32 %v259_v34, %v196_v12 }
  0xed   :  { %v263_v38 = vpop.eup %262  ;;  %119 = vst [vmem:[#allocation2] sm:$0xff] %v117_v35  ;;  %v118_v39 = vmul.f32 %v261_v36, %v103_v17 }
  0xee   :  { %215 = vst [vmem:[#allocation2 + $0x10] sm:$0xff] %v212_v37  ;;  %v213_v40 = vmul.f32 %v263_v38, %v198_v18 }
  0xef   :  { %120 = vst [vmem:[#allocation2 + $0x8] sm:$0xff] %v118_v39 }
  0xf0   :  { %216 = vst [vmem:[#allocation2 + $0x18] sm:$0xff] %v213_v40 }
  0xf1   :  { %275 = shalt.err (!%p272_p4)
}
  0xf2   :  { %s289_s20 = smov 256   ;;  %s290_s21 = smov 16  }
  0xf3   :  { %228 = dma.vmem_to_hbm [thread:$0]  %s223_s1, 512, %s333_s3, [#allocation3], %s289_s20, %s289_s20, %s290_s21  }
  0xf4   :  { %284 = dma.done.wait [#allocation3], 512  }
  0xf5   :  { %285 = vsyncadd [#allocation3], 4294966784 }
  0xf6   :  { %232 = vsyncpa [#allocation3], 1 }

</bundles_post_ra>
